<compile_context>
chip_gen: v5e
topology: v5e:2x2
jax: 0.10.0
libtpu: 0.0.40
codegen_flags: <defaults>
</compile_context>

<pallas_src>
import functools

import jax
import jax.numpy as jnp
from jax.experimental import pallas as pl
from jax.experimental.pallas import tpu as pltpu

# ----------------------------- configuration --------------------------------
BATCH = 2
SEQ = 8
HIDDEN = 32          # "bert_hidden_size" of the stubbed embedding model
NUM_FILTERS = 128
FILTER_SIZES = (3, 4, 5)
NUM_LABELS = 5
VOCAB = 64
LANE_PAD = 128       # lane-dense padded logits width
TARGET_M = 256       # target matmul rows per grid step (MXU fill on v6e/v7x)


# ------------------------------ Pallas kernel -------------------------------
def textcnn_kernel(xc_ref, w_ref, b_ref, mask_ref, fcw_ref, fcb_ref, out_ref, *,
                   batch_tile, seq, num_filters, filter_sizes):
    """One grid step == one batch tile.

    xc_ref   : (bt*S, kmax*H)  bf16  im2col'd embeddings (zero right-padded seq)
    w_ref    : (kmax*H, 3*F)   bf16  all conv banks fused along N (zero taps >= k)
    b_ref    : (1, 3*F)        f32   fused conv bias
    mask_ref : (S, 3*F)        f32   precomputed window-validity mask (1.0 / 0.0)
    fcw_ref  : (3*F, 128)      bf16  FC weight, label dim padded to 128 lanes
    fcb_ref  : (1, 128)        f32   FC bias (padded)
    out_ref  : (bt, 128)       f32   lane-dense padded logits
    """
    cat = len(filter_sizes) * num_filters

    # (1) all conv banks in ONE matmul: M=bt*S, K=kmax*H, N=3*F (bf16 in, f32 acc).
    conv = jnp.dot(xc_ref[...], w_ref[...], preferred_element_type=jnp.float32)
    conv = jnp.maximum(conv + b_ref[...], 0.0)                 # bias + ReLU (f32)

    # (2) + (3) mask invalid sliding windows with the precomputed constant mask
    #     (exact under ReLU: masked entries are 0, activations >= 0), then
    #     max-pool over time with one sublane reduction per batch row.
    conv3 = conv.reshape(batch_tile, seq, cat)
    pooled = jnp.max(conv3 * mask_ref[...][None], axis=1)      # (bt, 3*F)

    # (4) batched lane-dense FC: (bt, 3*F) @ (3*F, 128) + bias, single store.
    logits = jnp.dot(pooled.astype(fcw_ref.dtype), fcw_ref[...],
                     preferred_element_type=jnp.float32) + fcb_ref[...]
    out_ref[...] = logits.astype(out_ref.dtype)


# ------------------------------- wrapper -------------------------------------
def textcnn_forward(embedded, conv_ws, conv_bs, fc_w, fc_b):
    """embedded: (B, S, H) float32. Returns logits (B, NUM_LABELS)."""
    B, S, H = embedded.shape
    kmax = max(FILTER_SIZES)
    cat = len(FILTER_SIZES) * NUM_FILTERS

    # ---- batch tiling: fill the MXU M dim, keep >=2 grid steps at large B ----
    bt = max(1, min(B, -(-TARGET_M // S)))       # ceil(TARGET_M / S), capped at B
    b_pad = pl.cdiv(B, bt) * bt
    if b_pad != B:                               # ragged last tile: zero-pad batch
        embedded = jnp.pad(embedded, ((0, b_pad - B), (0, 0), (0, 0)))
    grid = (b_pad // bt,)

    # ---- wrapper-side layout plumbing (pure data movement, no arithmetic) ----
    # im2col with zero right-padding so one LHS covers every filter size.
    xp = jnp.pad(embedded, ((0, 0), (0, kmax - 1), (0, 0)))
    x_cols = jnp.concatenate([xp[:, j:j + S, :] for j in range(kmax)], axis=-1)
    x_cols = x_cols.reshape(b_pad * S, kmax * H).astype(jnp.bfloat16)

    # Fuse the conv banks along N; zero rows for taps beyond each bank's k.
    w_blocks = []
    for k, w in zip(FILTER_SIZES, conv_ws):                 # w: (k, H, F)
        wk = w.reshape(k * H, NUM_FILTERS)
        w_blocks.append(jnp.pad(wk, ((0, (kmax - k) * H), (0, 0))))
    w_fused = jnp.concatenate(w_blocks, axis=1).astype(jnp.bfloat16)  # (kmax*H, 3*F)
    b_fused = jnp.concatenate(conv_bs, axis=1).astype(jnp.float32)    # (1, 3*F)

    # Precomputed window-validity mask: 1.0 for t < S - k + 1, else 0.0.
    t = jnp.arange(S)[:, None]                                        # (S, 1)
    mask = jnp.concatenate(
        [jnp.broadcast_to((t < (S - k + 1)).astype(jnp.float32), (S, NUM_FILTERS))
         for k in FILTER_SIZES], axis=1)                              # (S, 3*F)

    # Lane-dense FC operands: pad label dim 5 -> 128.
    fc_w_pad = jnp.pad(fc_w, ((0, 0), (0, LANE_PAD - NUM_LABELS))).astype(jnp.bfloat16)
    fc_b_pad = jnp.pad(fc_b, ((0, 0), (0, LANE_PAD - NUM_LABELS))).astype(jnp.float32)

    kernel = functools.partial(textcnn_kernel, batch_tile=bt, seq=S,
                               num_filters=NUM_FILTERS, filter_sizes=FILTER_SIZES)

    # Constant index_maps -> operands stay resident across grid steps.
    full = lambda shape: pl.BlockSpec(shape, lambda i: tuple(0 for _ in shape))

    logits_padded = pl.pallas_call(
        kernel,
        out_shape=jax.ShapeDtypeStruct((b_pad, LANE_PAD), jnp.float32),
        grid_spec=pltpu.PrefetchScalarGridSpec(
            num_scalar_prefetch=0,
            grid=grid,
            in_specs=[
                pl.BlockSpec((bt * S, kmax * H), lambda i: (i, 0)),   # im2col LHS
                full((kmax * H, cat)),                                # fused conv W
                full((1, cat)),                                       # fused conv b
                full((S, cat)),                                       # window mask
                full((cat, LANE_PAD)),                                # FC W (padded)
                full((1, LANE_PAD)),                                  # FC b (padded)
            ],
            out_specs=pl.BlockSpec((bt, LANE_PAD), lambda i: (i, 0)),
        ),
        compiler_params=pltpu.CompilerParams(
            dimension_semantics=("parallel",)),   # >=2 steps shard across v7x TCs
    )(x_cols, w_fused, b_fused, mask, fc_w_pad, fc_b_pad)

    return logits_padded[:B, :NUM_LABELS]


# ------------------------------ glue / params -------------------------------
def init_params(key):
    keys = jax.random.split(key, 2 + 2 * len(FILTER_SIZES) + 2)
    it = iter(keys)
    emb_table = jax.random.normal(next(it), (VOCAB, HIDDEN), jnp.float32) * 0.02
    conv_ws, conv_bs = [], []
    for k in FILTER_SIZES:
        # PyTorch Conv1d weight is (F, H, k); we store it as (k, H, F) so tap j
        # is an (H, F) matmul operand (a checkpoint would be permute(2, 1, 0)).
        w = jax.random.normal(next(it), (k, HIDDEN, NUM_FILTERS), jnp.float32)
        w = w * (1.0 / jnp.sqrt(HIDDEN * k))
        b = jax.random.normal(next(it), (1, NUM_FILTERS), jnp.float32) * 0.01
        conv_ws.append(w)
        conv_bs.append(b)
    cat_dim = len(FILTER_SIZES) * NUM_FILTERS
    # PyTorch Linear weight is (NUM_LABELS, cat_dim); stored transposed.
    fc_w = jax.random.normal(next(it), (cat_dim, NUM_LABELS), jnp.float32)
    fc_w = fc_w * (1.0 / jnp.sqrt(cat_dim))
    fc_b = jax.random.normal(next(it), (1, NUM_LABELS), jnp.float32) * 0.01
    return emb_table, conv_ws, conv_bs, fc_w, fc_b


def embedding_model_stub(emb_table, input_ids, attention_mask):
    # TODO(synk): stands in for the pre-trained transformer; returns (B, S, H).
    del attention_mask
    return emb_table[input_ids]


def reference_forward(embedded, conv_ws, conv_bs, fc_w, fc_b):
    """Plain-JAX reference matching the PyTorch forward (eval mode).

    Operands are bf16-rounded exactly like the kernel's MXU inputs so the check
    is tight despite the bf16 cast; accumulation stays f32 on both paths.
    """
    B, S, H = embedded.shape
    x = embedded.astype(jnp.bfloat16).astype(jnp.float32)
    pooled = []
    for k, w, b in zip(FILTER_SIZES, conv_ws, conv_bs):
        wq = w.astype(jnp.bfloat16).astype(jnp.float32)
        L = S - k + 1
        acc = jnp.zeros((B, L, NUM_FILTERS), jnp.float32)
        for j in range(k):
            acc += jnp.einsum("bsh,hf->bsf", x[:, j:j + L, :], wq[j])
        acc = jax.nn.relu(acc + b[None, :, :])
        pooled.append(jnp.max(acc, axis=1))
    cat = jnp.concatenate(pooled, axis=1)
    catq = cat.astype(jnp.bfloat16).astype(jnp.float32)
    fwq = fc_w.astype(jnp.bfloat16).astype(jnp.float32)
    return catq @ fwq + fc_b


if __name__ == "__main__":
    key = jax.random.PRNGKey(0)
    pkey, dkey = jax.random.split(key)

    emb_table, conv_ws, conv_bs, fc_w, fc_b = init_params(pkey)

    input_ids = jax.random.randint(dkey, (BATCH, SEQ), 0, VOCAB, jnp.int32)
    attention_mask = jnp.ones((BATCH, SEQ), jnp.int32)

    embedded = embedding_model_stub(emb_table, input_ids, attention_mask)

    logits = textcnn_forward(embedded, conv_ws, conv_bs, fc_w, fc_b)
    logits = jax.block_until_ready(logits)

    ref = reference_forward(embedded, conv_ws, conv_bs, fc_w, fc_b)
    assert logits.shape == (BATCH, NUM_LABELS)
    assert jnp.allclose(logits, ref, atol=1e-2, rtol=1e-2), (logits, ref)

    print("KERNEL_OK")
</pallas_src>

<mosaic_0001>
module attributes {stable_mosaic.version = 11 : i64} {
  func.func @textcnn_kernel(%arg0: i32, %arg1: memref<16x160xbf16, #tpu.memory_space<vmem>>, %arg2: memref<160x384xbf16, #tpu.memory_space<vmem>>, %arg3: memref<1x384xf32, #tpu.memory_space<vmem>>, %arg4: memref<8x384xf32, #tpu.memory_space<vmem>>, %arg5: memref<384x128xbf16, #tpu.memory_space<vmem>>, %arg6: memref<1x128xf32, #tpu.memory_space<vmem>>, %arg7: memref<2x128xf32, #tpu.memory_space<vmem>>) attributes {dimension_semantics = [#tpu.dimension_semantics<parallel>], iteration_bounds = array<i64: 1>, scalar_prefetch = 0 : i64, scratch_operands = 0 : i64, tpu.core_type = #tpu.core_type<tc>, window_params = [{transform_indices = @transform_0, window_bounds = array<i64: 16, 160>}, {pipeline_mode = #tpu.pipeline_mode<synchronous>, transform_indices = @transform_1, window_bounds = array<i64: 160, 384>}, {pipeline_mode = #tpu.pipeline_mode<synchronous>, transform_indices = @transform_2, window_bounds = array<i64: 1, 384>}, {pipeline_mode = #tpu.pipeline_mode<synchronous>, transform_indices = @transform_3, window_bounds = array<i64: 8, 384>}, {pipeline_mode = #tpu.pipeline_mode<synchronous>, transform_indices = @transform_4, window_bounds = array<i64: 384, 128>}, {pipeline_mode = #tpu.pipeline_mode<synchronous>, transform_indices = @transform_5, window_bounds = array<i64: 1, 128>}, {transform_indices = @transform_6, window_bounds = array<i64: 2, 128>}]} {
    %c0 = arith.constant 0 : index
    %c0_0 = arith.constant 0 : index
    %0 = vector.load %arg1[%c0, %c0_0] : memref<16x160xbf16, #tpu.memory_space<vmem>>, vector<16x160xbf16>
    %c0_1 = arith.constant 0 : index
    %c0_2 = arith.constant 0 : index
    %1 = vector.load %arg2[%c0_1, %c0_2] : memref<160x384xbf16, #tpu.memory_space<vmem>>, vector<160x384xbf16>
    %cst = arith.constant dense<0.000000e+00> : vector<16x384xf32>
    %2 = tpu.matmul %0, %1, %cst {dimension_numbers = #tpu.dot_dimension_numbers<[1], [0], [0], [1], [0, 0, 1, 1], [], []>} : vector<16x160xbf16>, vector<160x384xbf16>, vector<16x384xf32> -> vector<16x384xf32>
    %c0_3 = arith.constant 0 : index
    %c0_4 = arith.constant 0 : index
    %3 = vector.load %arg3[%c0_3, %c0_4] : memref<1x384xf32, #tpu.memory_space<vmem>>, vector<1x384xf32>
    %4 = vector.broadcast %3 : vector<1x384xf32> to vector<16x384xf32>
    %5 = arith.addf %2, %4 : vector<16x384xf32>
    %cst_5 = arith.constant 0.000000e+00 : f32
    %6 = vector.broadcast %cst_5 : f32 to vector<16x384xf32>
    %7 = arith.maximumf %5, %6 : vector<16x384xf32>
    %8 = vector.shape_cast %7 : vector<16x384xf32> to vector<2x8x384xf32>
    %c0_6 = arith.constant 0 : index
    %c0_7 = arith.constant 0 : index
    %9 = vector.load %arg4[%c0_6, %c0_7] : memref<8x384xf32, #tpu.memory_space<vmem>>, vector<8x384xf32>
    %10 = vector.shape_cast %9 : vector<8x384xf32> to vector<1x8x384xf32>
    %11 = vector.broadcast %10 : vector<1x8x384xf32> to vector<2x8x384xf32>
    %12 = arith.mulf %8, %11 : vector<2x8x384xf32>
    %cst_8 = arith.constant dense<0xFF800000> : vector<2x384xf32>
    %13 = vector.multi_reduction <maximumf>, %12, %cst_8 [1] : vector<2x8x384xf32> to vector<2x384xf32>
    %14 = arith.truncf %13 : vector<2x384xf32> to vector<2x384xbf16>
    %c0_9 = arith.constant 0 : index
    %c0_10 = arith.constant 0 : index
    %15 = vector.load %arg5[%c0_9, %c0_10] : memref<384x128xbf16, #tpu.memory_space<vmem>>, vector<384x128xbf16>
    %cst_11 = arith.constant dense<0.000000e+00> : vector<2x128xf32>
    %16 = tpu.matmul %14, %15, %cst_11 {dimension_numbers = #tpu.dot_dimension_numbers<[1], [0], [0], [1], [0, 0, 1, 1], [], []>} : vector<2x384xbf16>, vector<384x128xbf16>, vector<2x128xf32> -> vector<2x128xf32>
    %c0_12 = arith.constant 0 : index
    %c0_13 = arith.constant 0 : index
    %17 = vector.load %arg6[%c0_12, %c0_13] : memref<1x128xf32, #tpu.memory_space<vmem>>, vector<1x128xf32>
    %18 = vector.broadcast %17 : vector<1x128xf32> to vector<2x128xf32>
    %19 = arith.addf %16, %18 : vector<2x128xf32>
    %c0_14 = arith.constant 0 : index
    %c0_15 = arith.constant 0 : index
    %20 = vector.load %arg7[%c0_14, %c0_15] : memref<2x128xf32, #tpu.memory_space<vmem>>, vector<2x128xf32>
    tpu.vector_store %arg7[%c0_14, %c0_15], %19 {strides = array<i32>} : memref<2x128xf32, #tpu.memory_space<vmem>>, vector<2x128xf32>,
    return
  }
  func.func @transform_0(%arg0: i32) -> (i32, i32) {
    %c0_i32 = arith.constant 0 : i32
    %c0_i32_0 = arith.constant 0 : i32
    return %arg0, %c0_i32 : i32, i32
  }
  func.func @transform_1(%arg0: i32) -> (i32, i32) {
    %c0_i32 = arith.constant 0 : i32
    %c0_i32_0 = arith.constant 0 : i32
    %c0_i32_1 = arith.constant 0 : i32
    return %c0_i32, %c0_i32_0 : i32, i32
  }
  func.func @transform_2(%arg0: i32) -> (i32, i32) {
    %c0_i32 = arith.constant 0 : i32
    %c0_i32_0 = arith.constant 0 : i32
    %c0_i32_1 = arith.constant 0 : i32
    return %c0_i32, %c0_i32_0 : i32, i32
  }
  func.func @transform_3(%arg0: i32) -> (i32, i32) {
    %c0_i32 = arith.constant 0 : i32
    %c0_i32_0 = arith.constant 0 : i32
    %c0_i32_1 = arith.constant 0 : i32
    return %c0_i32, %c0_i32_0 : i32, i32
  }
  func.func @transform_4(%arg0: i32) -> (i32, i32) {
    %c0_i32 = arith.constant 0 : i32
    %c0_i32_0 = arith.constant 0 : i32
    %c0_i32_1 = arith.constant 0 : i32
    return %c0_i32, %c0_i32_0 : i32, i32
  }
  func.func @transform_5(%arg0: i32) -> (i32, i32) {
    %c0_i32 = arith.constant 0 : i32
    %c0_i32_0 = arith.constant 0 : i32
    %c0_i32_1 = arith.constant 0 : i32
    return %c0_i32, %c0_i32_0 : i32, i32
  }
  func.func @transform_6(%arg0: i32) -> (i32, i32) {
    %c0_i32 = arith.constant 0 : i32
    %c0_i32_0 = arith.constant 0 : i32
    return %arg0, %c0_i32 : i32, i32
  }
}

</mosaic_0001>

<bundles_post_ra>
// kernel: tpu_custom_call.1
= control target key start
LH: loop header
LB: loop body
LE: loop exit
PB: predicated region body
PF: predicated region fallthrough
CT: control target
= control target key end

     0   :  { %11 = vsyncpa [#allocation3], 0  ;;  %s1267_s0 = inlined_call_operand.hbm [shape: bf16[16,160], index: 0, kind: input, shape index: {}]   ;;  %s1268_s1 = inlined_call_operand.hbm [shape: bf16[160,384], index: 1, kind: input, shape index: {}]   ;;  %s1269_s2 = inlined_call_operand.hbm [shape: f32[1,384], index: 2, kind: input, shape index: {}]   ;;  %s1270_s3 = inlined_call_operand.hbm [shape: f32[8,384], index: 3, kind: input, shape index: {}]   ;;  %s1271_s4 = inlined_call_operand.hbm [shape: bf16[384,128], index: 4, kind: input, shape index: {}]   ;;  %s1272_s5 = inlined_call_operand.vmem [shape: f32[1,128], index: 5, kind: input, shape index: {}]   ;;  %s1273_s6 = inlined_call_operand.hbm [shape: f32[2,128], index: 6, kind: output, shape index: {}]  }
   0x1   :  { %12 = vsyncpa [#allocation6], 0 }
   0x2   :  { %13 = vsyncpa [#allocation9], 0  ;;  %s32_s23 = sshll.u32 %s1268_s1, 4  ;;  %s33_s23 = int_to_ptr.hbm [resolvable:$true] %s32_s23 }
   0x3   :  { %14 = vsyncpa [#allocation4], 0  ;;  %s1188_s24 = smov [#allocation5]   ;;  %s57_s28 = sshll.u32 %s1270_s3, 4  ;;  %s58_s28 = int_to_ptr.hbm [resolvable:$true] %s57_s28 }
   0x4   :  { %s34_s25 = sshll.u32 %s1188_s24, 4  ;;  %s1189_s29 = smov 192   ;;  %s35_s25 = int_to_ptr.vmem [resolvable:$true] %s34_s25 }
   0x5   :  { %s1190_s30 = smov 12   ;;  %s1191_s7 = smov [#allocation8]  }
   0x6   :  { %40 = dma.hbm_to_vmem [thread:$0]  %s33_s23, 3840, %s35_s25, [#allocation6], %s1189_s29, %s1189_s29, %s1190_s30  }
   0x7   :  { %s59_s8 = sshll.u32 %s1191_s7, 4  ;;  %s19_s11 = sshll.u32 %s1267_s0, 4  ;;  %s60_s8 = int_to_ptr.vmem [resolvable:$true] %s59_s8  ;;  %s20_s11 = int_to_ptr.hbm [resolvable:$true] %s19_s11 }
   0x8   :  { %62 = dma.hbm_to_vmem [thread:$0]  %s58_s28, 384, %s60_s8, [#allocation9]  }
   0x9   :  { %s1192_s1 = smov [#allocation2]   ;;  %s46_s3 = sshll.u32 %s1269_s2, 4  ;;  %s47_s3 = int_to_ptr.hbm [resolvable:$true] %s46_s3 }
   0xa   :  { %s21_s12 = sshll.u32 %s1192_s1, 4  ;;  %s1193_s15 = smov 128   ;;  %s22_s12 = int_to_ptr.vmem [resolvable:$true] %s21_s12 }
   0xb   :  { %s1194_s16 = smov 8   ;;  %s1195_s17 = smov [#allocation7]  }
   0xc   :  { %27 = dma.hbm_to_vmem [thread:$0]  %s20_s11, 256, %s22_s12, [#allocation3], %s1193_s15, %s1193_s15, %s1194_s16  }
   0xd   :  { %s48_s18 = sshll.u32 %s1195_s17, 4  ;;  %s67_s0 = sshll.u32 %s1271_s4, 4  ;;  %s49_s18 = int_to_ptr.vmem [resolvable:$true] %s48_s18  ;;  %s68_s0 = int_to_ptr.hbm [resolvable:$true] %s67_s0 }
   0xe   :  { %51 = dma.hbm_to_vmem [thread:$0]  %s47_s3, 48, %s49_s18, [#allocation6]  }
   0xf   :  { %s1196_s21 = smov [#allocation10]   ;;  %s1197_s23 = smov 64  }
  0x10   :  { %s69_s22 = sshll.u32 %s1196_s21, 4  ;;  %s1198_s24 = smov 4   ;;  %s70_s22 = int_to_ptr.vmem [resolvable:$true] %s69_s22 }
  0x11   :  { %75 = dma.hbm_to_vmem [thread:$0]  %s68_s0, 3072, %s70_s22, [#allocation9], %s1197_s23, %s1197_s23, %s1198_s24  }
  0x12   :  { %1180 = dma.done.wait [#allocation3], 256  }
  0x13   :  { %1181 = vsyncadd [#allocation3], 4294967040 }
  0x14   :  { %1182 = dma.done.wait [#allocation6], 3888  }
  0x15   :  { %1183 = vsyncadd [#allocation6], 4294963408 }
  0x16   :  { %1184 = dma.done.wait [#allocation9], 3456  }
  0x17   :  { %1185 = vsyncadd [#allocation9], 4294963840  ;;  %v834_v0 = vld [vmem:[#allocation5 + $0xa8] sm:$0xf]  ;;  %v991_v1 = vld [vmem:[#allocation5 + $0xb0] sm:$0xf0] }
  0x18   :  { %v858_v2 = vld [vmem:[#allocation5 + $0xd8] sm:$0xf]  ;;  %v835_v3 = vor.u32 %v991_v1, %v834_v0  ;;  %v997_v4 = vld [vmem:[#allocation5 + $0xe0] sm:$0xf0]  ;;  %v990_v5 = vld [vmem:[#allocation5 + $0xac] sm:$0xf] }
  0x19   :  { %v836_v6 = vld [vmem:[#allocation5 + $0xb4] sm:$0xf0]  ;;  %vm318_vm0 = vcmask 261120   ;;  %v859_v7 = vor.u32 %v997_v4, %v858_v2  ;;  %v996_v9 = vld [vmem:[#allocation5 + $0xdc] sm:$0xf]  ;;  %vm527_vm1 = vcmask 1041409  }
  0x1a   :  { %v839_v8 = vor.u32 %v990_v5, %v836_v6  ;;  %v860_v10 = vld [vmem:[#allocation5 + $0xe4] sm:$0xf0]  ;;  %v822_v11 = vld [vmem:[#allocation5 + $0x90] sm:$0xf]  ;;  %322 = vmatpush.bf16.msra.mxu0 %v835_v3  ;;  %v988_v13 = vld [vmem:[#allocation5 + $0x98] sm:$0xf0] }
  0x1b   :  { %v863_v12 = vor.u32 %v996_v9, %v860_v10  ;;  %v846_v14 = vld [vmem:[#allocation5 + $0xc0] sm:$0xf]  ;;  %v994_v15 = vld [vmem:[#allocation5 + $0xc8] sm:$0xf0]  ;;  %342 = vmatpush.bf16.msra.mxu1 %v859_v7  ;;  %v823_v16 = vor.u32 %v988_v13, %v822_v11  ;;  %v987_v18 = vld [vmem:[#allocation5 + $0x94] sm:$0xf] }
  0x1c   :  { %350 = vmatpush.bf16.msra.mxu2 %v839_v8  ;;  %v847_v17 = vor.u32 %v994_v15, %v846_v14  ;;  %v824_v19 = vld [vmem:[#allocation5 + $0x9c] sm:$0xf0]  ;;  %v993_v20 = vld [vmem:[#allocation5 + $0xc4] sm:$0xf]  ;;  %v848_v22 = vld [vmem:[#allocation5 + $0xcc] sm:$0xf0] }
  0x1d   :  { %370 = vmatpush.bf16.msra.mxu3 %v863_v12  ;;  %v827_v21 = vor.u32 %v987_v18, %v824_v19  ;;  %v842_v23 = vld [vmem:[#allocation5 + $0xb0] sm:$0xf]  ;;  %v992_v24 = vld [vmem:[#allocation5 + $0xb8] sm:$0xf0]  ;;  %v851_v25 = vor.u32 %v993_v20, %v848_v22  ;;  %v810_v27 = vld [vmem:[#allocation5 + $0x78] sm:$0xf] }
  0x1e   :  { %v843_v26 = vor.u32 %v992_v24, %v842_v23  ;;  %v985_v28 = vld [vmem:[#allocation5 + $0x80] sm:$0xf0]  ;;  %v984_v29 = vld [vmem:[#allocation5 + $0x7c] sm:$0xf]  ;;  %323 = vmatpush.bf16.msra.mxu0 %v823_v16  ;;  %v812_v31 = vld [vmem:[#allocation5 + $0x84] sm:$0xf0] }
  0x1f   :  { %v811_v30 = vor.u32 %v985_v28, %v810_v27  ;;  %v967_v32 = vld [vmem:[#allocation2 + $0x4] sm:$0xf]  ;;  %v744_v33 = vld [vmem:[#allocation2 + $0x8] sm:$0xf0]  ;;  %343 = vmatpush.bf16.msra.mxu1 %v847_v17  ;;  %v815_v34 = vor.u32 %v984_v29, %v812_v31  ;;  %v830_v36 = vld [vmem:[#allocation5 + $0x98] sm:$0xf] }
  0x20   :  { %351 = vmatpush.bf16.msra.mxu2 %v827_v21  ;;  %v1250_v35 = vor.u32 %v967_v32, %v744_v33  ;;  %v989_v37 = vld [vmem:[#allocation5 + $0xa0] sm:$0xf0]  ;;  %v798_v38 = vld [vmem:[#allocation5 + $0x60] sm:$0xf]  ;;  %v982_v40 = vld [vmem:[#allocation5 + $0x68] sm:$0xf0] }
  0x21   :  { %371 = vmatpush.bf16.msra.mxu3 %v851_v25  ;;  %v831_v39 = vor.u32 %v989_v37, %v830_v36  ;;  %v981_v41 = vld [vmem:[#allocation5 + $0x64] sm:$0xf]  ;;  %v800_v42 = vld [vmem:[#allocation5 + $0x6c] sm:$0xf0]  ;;  %v818_v43 = vld [vmem:[#allocation5 + $0x80] sm:$0xf]  ;;  %v799_v45 = vor.u32 %v982_v40, %v798_v38 }
  0x22   :  { %v986_v44 = vld [vmem:[#allocation5 + $0x88] sm:$0xf0]  ;;  %324 = vmatpush.bf16.msra.mxu0 %v811_v30  ;;  %868 = vmatmul.msk.bf16.vlgmr.msra.gmra.mxu1 %vm318_vm0, %v1250_v35  ;;  %v786_v46 = vld [vmem:[#allocation5 + $0x48] sm:$0xf]  ;;  %v803_v47 = vor.u32 %v981_v41, %v800_v42  ;;  %v979_v48 = vld [vmem:[#allocation5 + $0x50] sm:$0xf0] }
  0x23   :  { %378 = vmatpush.bf16.msrb.mxu1 %v843_v26  ;;  %v866_v49 = vld [vmem:[#allocation5 + $0xe0] sm:$0xf]  ;;  %v998_v50 = vld [vmem:[#allocation5 + $0xe8] sm:$0xf0]  ;;  %v819_v51 = vor.u32 %v986_v44, %v818_v43  ;;  %v788_v53 = vld [vmem:[#allocation5 + $0x54] sm:$0xf0]  ;;  %v787_v57 = vor.u32 %v979_v48, %v786_v46 }
  0x24   :  { %352 = vmatpush.bf16.msra.mxu2 %v815_v34  ;;  %869 = vmatmul.msk.bf16.vlgmr.msra.gmra.mxu3 %vm318_vm0, %v1250_v35  ;;  %v978_v52 = vld [vmem:[#allocation5 + $0x4c] sm:$0xf]  ;;  %v867_v54 = vor.u32 %v998_v50, %v866_v49  ;;  %v806_v55 = vld [vmem:[#allocation5 + $0x68] sm:$0xf]  ;;  %v983_v56 = vld [vmem:[#allocation5 + $0x70] sm:$0xf0] }
  0x25   :  { %v854_v58 = vld [vmem:[#allocation5 + $0xc8] sm:$0xf]  ;;  %v995_v59 = vld [vmem:[#allocation5 + $0xd0] sm:$0xf0]  ;;  %v791_v60 = vor.u32 %v978_v52, %v788_v53  ;;  %v774_v61 = vld [vmem:[#allocation5 + $0x30] sm:$0xf]  ;;  %v807_v0 = vor.u32 %v983_v56, %v806_v55 }
  0x26   :  { %325 = vmatpush.bf16.msra.mxu0 %v799_v45  ;;  %398 = vmatpush.bf16.msrb.mxu3 %v867_v54  ;;  %v976_v62 = vld [vmem:[#allocation5 + $0x38] sm:$0xf0]  ;;  %v855_v63 = vor.u32 %v995_v59, %v854_v58  ;;  %v975_v1 = vld [vmem:[#allocation5 + $0x34] sm:$0xf]  ;;  %v776_v2 = vld [vmem:[#allocation5 + $0x3c] sm:$0xf0] }
  0x27   :  { %379 = vmatpush.bf16.msrb.mxu1 %v831_v39  ;;  %v794_v3 = vld [vmem:[#allocation5 + $0x50] sm:$0xf]  ;;  %v980_v4 = vld [vmem:[#allocation5 + $0x58] sm:$0xf0]  ;;  %v775_v5 = vor.u32 %v976_v62, %v774_v61  ;;  %v779_v6 = vor.u32 %v975_v1, %v776_v2  ;;  %v762_v7 = vld [vmem:[#allocation5 + $0x18] sm:$0xf] }
  0x28   :  { %353 = vmatpush.bf16.msra.mxu2 %v803_v47  ;;  %v973_v8 = vld [vmem:[#allocation5 + $0x20] sm:$0xf0]  ;;  %v795_v9 = vor.u32 %v980_v4, %v794_v3  ;;  %v972_v10 = vld [vmem:[#allocation5 + $0x1c] sm:$0xf]  ;;  %v764_v11 = vld [vmem:[#allocation5 + $0x24] sm:$0xf0] }
  0x29   :  { %v782_v12 = vld [vmem:[#allocation5 + $0x38] sm:$0xf]  ;;  %v977_v13 = vld [vmem:[#allocation5 + $0x40] sm:$0xf0]  ;;  %v763_v14 = vor.u32 %v973_v8, %v762_v7  ;;  %v767_v15 = vor.u32 %v972_v10, %v764_v11  ;;  %v750_v16 = vld [vmem:[#allocation5] sm:$0xf] }
  0x2a   :  { %326 = vmatpush.bf16.msra.mxu0 %v787_v57  ;;  %399 = vmatpush.bf16.msrb.mxu3 %v855_v63  ;;  %v970_v17 = vld [vmem:[#allocation5 + $0x8] sm:$0xf0]  ;;  %v783_v18 = vor.u32 %v977_v13, %v782_v12  ;;  %v969_v19 = vld [vmem:[#allocation5 + $0x4] sm:$0xf]  ;;  %v752_v20 = vld [vmem:[#allocation5 + $0xc] sm:$0xf0] }
  0x2b   :  { %380 = vmatpush.bf16.msrb.mxu1 %v819_v51  ;;  %v770_v21 = vld [vmem:[#allocation5 + $0x20] sm:$0xf]  ;;  %v974_v22 = vld [vmem:[#allocation5 + $0x28] sm:$0xf0]  ;;  %v751_v23 = vor.u32 %v970_v17, %v750_v16  ;;  %v742_v24 = vld [vmem:[#allocation2] sm:$0xf]  ;;  %v755_v26 = vor.u32 %v969_v19, %v752_v20 }
  0x2c   :  { %354 = vmatpush.bf16.msra.mxu2 %v791_v60  ;;  %v968_v25 = vld [vmem:[#allocation2 + $0x4] sm:$0xf0]  ;;  %v771_v27 = vor.u32 %v974_v22, %v770_v21  ;;  %v758_v29 = vld [vmem:[#allocation5 + $0x8] sm:$0xf]  ;;  %v971_v30 = vld [vmem:[#allocation5 + $0x10] sm:$0xf0] }
  0x2d   :  { %v743_v28 = vor.u32 %v968_v25, %v742_v24  ;;  %v759_v31 = vor.u32 %v971_v30, %v758_v29  ;;  %v1006_v32 = vld [vmem:[#allocation10 + $0x38] sm:$0xff]  ;;  %v1005_v33 = vld [vmem:[#allocation10 + $0x30] sm:$0xff]  ;;  %v1004_v36 = vld [vmem:[#allocation10 + $0x28] sm:$0xff]  ;;  %s1199_s25 = smov [#allocation11]   ;;  %s728_s29 = sshll.u32 %s1273_s6, 4  ;;  %s729_s29 = int_to_ptr.hbm [resolvable:$true] %s728_s29 }
  0x2e   :  { %327 = vmatpush.bf16.msra.mxu0 %v775_v5  ;;  %681 = vmatpush.bf16.msra.mxu3 %v1006_v32  ;;  %v1022_v34 = vld [vmem:[#allocation10 + $0xb8] sm:$0xff]  ;;  %v1021_v37 = vld [vmem:[#allocation10 + $0xb0] sm:$0xff]  ;;  %v1003_v39 = vld [vmem:[#allocation10 + $0x20] sm:$0xff]  ;;  %s726_s26 = sshll.u32 %s1199_s25, 4  ;;  %s727_s26 = int_to_ptr.vmem [resolvable:$true] %s726_s26 }
  0x2f   :  { %381 = vmatpush.bf16.msrb.mxu1 %v807_v0  ;;  %v1013_v38 = vld [vmem:[#allocation10 + $0x70] sm:$0xff]  ;;  %v1020_v40 = vld [vmem:[#allocation10 + $0xa8] sm:$0xff]  ;;  %v1002_v44 = vld [vmem:[#allocation10 + $0x18] sm:$0xff] }
  0x30   :  { %355 = vmatpush.bf16.msra.mxu2 %v779_v6  ;;  %v1012_v42 = vld [vmem:[#allocation10 + $0x68] sm:$0xff]  ;;  %v1019_v45 = vld [vmem:[#allocation10 + $0xa0] sm:$0xff]  ;;  %v1001_v47 = vld [vmem:[#allocation10 + $0x10] sm:$0xff] }
  0x31   :  { %v1011_v46 = vld [vmem:[#allocation10 + $0x60] sm:$0xff]  ;;  %v1018_v48 = vld [vmem:[#allocation10 + $0x98] sm:$0xff]  ;;  %v1000_v52 = vld [vmem:[#allocation10 + $0x8] sm:$0xff] }
  0x32   :  { %328 = vmatpush.bf16.msra.mxu0 %v763_v14  ;;  %682 = vmatpush.bf16.msra.mxu3 %v1005_v33  ;;  %v141_v49 = vld [vmem:[#allocation7] sm:$0x7]  ;;  %v1010_v50 = vld [vmem:[#allocation10 + $0x58] sm:$0xff]  ;;  %v1017_v54 = vld [vmem:[#allocation10 + $0x90] sm:$0xff] }
  0x33   :  { %382 = vmatpush.bf16.msrb.mxu1 %v795_v9  ;;  %v143_v53 = vperm.slane %v141_v49, 0  ;;  %v1009_v56 = vld [vmem:[#allocation10 + $0x50] sm:$0xff]  ;;  %v999_v58 = vld [vmem:[#allocation10] sm:$0xff]  ;;  %v1016_v59 = vld [vmem:[#allocation10 + $0x88] sm:$0xff]  ;;  %v145_v63 = vperm.slane %v141_v49, 2  ;;  %v144_v1 = vperm.slane %v141_v49, 1 }
  0x34   :  { %356 = vmatpush.bf16.msra.mxu2 %v767_v15  ;;  %870 = vmatmul.msk.bf16.vlgmr.msrb.gmra.mxu3 %vm318_vm0, %v1250_v35  ;;  %v1014_v35 = vld [vmem:[#allocation10 + $0x78] sm:$0xff]  ;;  %v1008_v60 = vld [vmem:[#allocation10 + $0x48] sm:$0xff]  ;;  %v1015_v2 = vld [vmem:[#allocation10 + $0x80] sm:$0xff] }
  0x35   :  { %v412_v0 = vld [vmem:[#allocation8] sm:$0xff]  ;;  %v1007_v3 = vld [vmem:[#allocation10 + $0x40] sm:$0xff]  ;;  %v414_v15 = vld [vmem:[#allocation8 + $0x10] sm:$0xff] }
  0x36   :  { %329 = vmatpush.bf16.msra.mxu0 %v751_v23  ;;  %683 = vmatpush.bf16.msra.mxu3 %v1004_v36  ;;  %v413_v19 = vld [vmem:[#allocation8 + $0x8] sm:$0xff] }
  0x37   :  { %383 = vmatpush.bf16.msrb.mxu1 %v783_v18 }
  0x38   :  { %357 = vmatpush.bf16.msra.mxu2 %v755_v26 }
  0x39   :  { %330 = vmatmul.bf16.vlgmr.msra.gmra.mxu0 %v743_v28 }
  0x3a   :  { %694 = vmatpush.bf16.msrb.mxu0 %v1014_v35  ;;  %684 = vmatpush.bf16.msra.mxu3 %v1003_v39 }
  0x3b   :  { %384 = vmatpush.bf16.msrb.mxu1 %v771_v27  ;;  %358 = vmatmul.bf16.vlgmr.msra.gmra.mxu2 %v743_v28 }
  0x3c   :  { %707 = vmatpush.bf16.msrb.mxu2 %v1022_v34 }
  0x3e   :  { %695 = vmatpush.bf16.msrb.mxu0 %v1013_v38  ;;  %685 = vmatpush.bf16.msra.mxu3 %v1002_v44 }
  0x3f   :  { %385 = vmatpush.bf16.msrb.mxu1 %v759_v31 }
  0x40   :  { %708 = vmatpush.bf16.msrb.mxu2 %v1021_v37 }
  0x42   :  { %386 = vmatmul.bf16.vlgmr.msrb.gmra.mxu1 %v743_v28  ;;  %696 = vmatpush.bf16.msrb.mxu0 %v1012_v42 }
  0x43   :  { %686 = vmatpush.bf16.msra.mxu3 %v1001_v47 }
  0x44   :  { %709 = vmatpush.bf16.msrb.mxu2 %v1020_v40 }
  0x46   :  { %697 = vmatpush.bf16.msrb.mxu0 %v1011_v46 }
  0x47   :  { %687 = vmatpush.bf16.msra.mxu3 %v1000_v52 }
  0x48   :  { %710 = vmatpush.bf16.msrb.mxu2 %v1019_v45 }
  0x4a   :  { %698 = vmatpush.bf16.msrb.mxu0 %v1010_v50 }
  0x4b   :  { %688 = vmatpush.bf16.msra.mxu3 %v999_v58 }
  0x4c   :  { %711 = vmatpush.bf16.msrb.mxu2 %v1018_v48 }
  0x4e   :  { %699 = vmatpush.bf16.msrb.mxu0 %v1009_v56 }
  0x50   :  { %712 = vmatpush.bf16.msrb.mxu2 %v1017_v54 }
  0x52   :  { %700 = vmatpush.bf16.msrb.mxu0 %v1008_v60 }
  0x54   :  { %713 = vmatpush.bf16.msrb.mxu2 %v1016_v59 }
  0x56   :  { %701 = vmatpush.bf16.msrb.mxu0 %v1007_v3 }
  0x58   :  { %714 = vmatpush.bf16.msrb.mxu2 %v1015_v2 }
  0x9f   :  { %v345_v43 = vpop.f32.mrf.mxu1 }
  0xa7   :  { %v373_v41 = vpop.f32.mrf.mxu3  ;;  %v347_v55 = vpop.f32.mrf.mxu1 }
  0xaf   :  { %v375_v51 = vpop.f32.mrf.mxu3 }
  0xb6   :  { %v331_v57 = vpop.f32.mrf.mxu0 }
  0xb7   :  { %v332_v61 = vadd.f32 %v331_v57, %v143_v53  ;;  %v401_v5 = vpop.f32.mrf.mxu3 }
  0xb9   :  { %v346_v62 = vadd.f32 %v345_v43, %v332_v61 }
  0xbb   :  { %v406_v4 = vmax.f32 %v346_v62, 0.0 }
  0xbd   :  { %v415_v7 = vmul.f32 %v412_v0, %v406_v4 }
  0xbe   :  { %v359_v9 = vpop.f32.mrf.mxu2  ;;  %v333_v11 = vpop.f32.mrf.mxu0 }
  0xbf   :  { %v387_v6 = vpop.f32.mrf.mxu1  ;;  %v360_v10 = vadd.f32 %v359_v9, %v144_v1  ;;  %v421_v12 = vrot.slane %v415_v7, 4  ;;  %v334_v14 = vadd.f32 %v333_v11, %v143_v53  ;;  %v403_v33 = vpop.f32.mrf.mxu3 }
  0xc0   :  { %v388_v8 = vadd.f32 %v387_v6, %v145_v63 }
  0xc1   :  { %v374_v16 = vadd.f32 %v373_v41, %v360_v10  ;;  %v422_v17 = vmax.f32 %v415_v7, %v421_v12  ;;  %v348_v20 = vadd.f32 %v347_v55, %v334_v14 }
  0xc2   :  { %v402_v13 = vadd.f32 %v401_v5, %v388_v8 }
  0xc3   :  { %v407_v21 = vmax.f32 %v374_v16, 0.0  ;;  %v423_v22 = vrot.slane %v422_v17, 2  ;;  %v409_v24 = vmax.f32 %v348_v20, 0.0 }
  0xc4   :  { %v408_v18 = vmax.f32 %v402_v13, 0.0 }
  0xc5   :  { %v416_v25 = vmul.f32 %v413_v19, %v407_v21  ;;  %v424_v27 = vmax.f32 %v422_v17, %v423_v22  ;;  %v418_v29 = vmul.f32 %v412_v0, %v409_v24 }
  0xc6   :  { %v417_v23 = vmul.f32 %v414_v15, %v408_v18  ;;  %v361_v31 = vpop.f32.mrf.mxu2 }
  0xc7   :  { %v389_v26 = vpop.f32.mrf.mxu1  ;;  %v427_v32 = vrot.slane %v416_v25, 4  ;;  %v362_v34 = vadd.f32 %v361_v31, %v144_v1  ;;  %v439_v36 = vrot.slane %v418_v29, 4  ;;  %v425_v40 = vrot.slane %v424_v27, 1 }
  0xc8   :  { %v433_v28 = vrot.slane %v417_v23, 4  ;;  %v390_v30 = vadd.f32 %v389_v26, %v145_v63 }
  0xc9   :  { %v428_v38 = vmax.f32 %v416_v25, %v427_v32  ;;  %v376_v39 = vadd.f32 %v375_v51, %v362_v34  ;;  %v440_v42 = vmax.f32 %v418_v29, %v439_v36  ;;  %v426_v52 = vmax.f32 %v424_v27, %v425_v40  ;;  %v1035_v25 = vld [vmem:[%s1272_s5] ss:$0 sm:$0xff] }
  0xca   :  { %v434_v35 = vmax.f32 %v417_v23, %v433_v28  ;;  %v404_v37 = vadd.f32 %v403_v33, %v390_v30 }
  0xcb   :  { %v429_v44 = vrot.slane %v428_v38, 2  ;;  %v410_v45 = vmax.f32 %v376_v39, 0.0  ;;  %v441_v47 = vrot.slane %v440_v42, 2  ;;  %v457_v60 = vpack.c.bf16 %v426_v52, %v426_v52 }
  0xcc   :  { %v435_v41 = vrot.slane %v434_v35, 2  ;;  %v411_v43 = vmax.f32 %v404_v37, 0.0 }
  0xcd   :  { %v430_v49 = vmax.f32 %v428_v38, %v429_v44  ;;  %v419_v50 = vmul.f32 %v413_v19, %v410_v45  ;;  %v442_v53 = vmax.f32 %v440_v42, %v441_v47  ;;  %v521_v5 = vunpack.c.l.b16 %v457_v60 }
  0xce   :  { %v436_v46 = vmax.f32 %v434_v35, %v435_v41  ;;  %v420_v48 = vmul.f32 %v414_v15, %v411_v43 }
  0xcf   :  { %v445_v55 = vrot.slane %v419_v50, 4  ;;  %v443_v57 = vrot.slane %v442_v53, 1  ;;  %v431_v59 = vrot.slane %v430_v49, 1 }
  0xd0   :  { %v451_v54 = vrot.slane %v420_v48, 4  ;;  %v437_v56 = vrot.slane %v436_v46, 1 }
  0xd1   :  { %v446_v51 = vmax.f32 %v419_v50, %v445_v55  ;;  %v444_v61 = vmax.f32 %v442_v53, %v443_v57  ;;  %v432_v4 = vmax.f32 %v430_v49, %v431_v59 }
  0xd2   :  { %v452_v58 = vmax.f32 %v420_v48, %v451_v54  ;;  %v438_v2 = vmax.f32 %v436_v46, %v437_v56 }
  0xd3   :  { %v447_v63 = vrot.slane %v446_v51, 2  ;;  %v460_v0 = vpack.c.bf16 %v444_v61, %v444_v61  ;;  %v458_v14 = vpack.c.bf16 %v432_v4, %v432_v4 }
  0xd4   :  { %v453_v62 = vrot.slane %v452_v58, 2  ;;  %v459_v11 = vpack.c.bf16 %v438_v2, %v438_v2 }
  0xd5   :  { %v448_v3 = vmax.f32 %v446_v51, %v447_v63  ;;  %v524_v6 = vunpack.c.l.b16 %v460_v0  ;;  %v522_v19 = vunpack.c.l.b16 %v458_v14 }
  0xd6   :  { %v454_v1 = vmax.f32 %v452_v58, %v453_v62  ;;  %v523_v17 = vunpack.c.l.b16 %v459_v11 }
  0xd7   :  { %v449_v8 = vrot.slane %v448_v3, 1  ;;  %v528_v9 = vsel %vm527_vm1, %v524_v6, %v521_v5 }
  0xd8   :  { %v455_v7 = vrot.slane %v454_v1, 1  ;;  %v531_v12 = vpack.c.b16 %v528_v9, %v528_v9 }
  0xd9   :  { %v450_v13 = vmax.f32 %v448_v3, %v449_v8 }
  0xda   :  { %v456_v10 = vmax.f32 %v454_v1, %v455_v7  ;;  %689 = vmatmul.bf16.vlgmr.msra.gmra.mxu3 %v531_v12 }
  0xdb   :  { %v461_v16 = vpack.c.bf16 %v450_v13, %v450_v13 }
  0xdc   :  { %v462_v15 = vpack.c.bf16 %v456_v10, %v456_v10 }
  0xdd   :  { %v525_v20 = vunpack.c.l.b16 %v461_v16 }
  0xde   :  { %v526_v18 = vunpack.c.l.b16 %v462_v15 }
  0xdf   :  { %v529_v23 = vsel %vm527_vm1, %v525_v20, %v522_v19 }
  0xe0   :  { %v530_v21 = vsel %vm527_vm1, %v526_v18, %v523_v17  ;;  %v532_v24 = vpack.c.b16 %v529_v23, %v529_v23 }
  0xe1   :  { %v533_v22 = vpack.c.b16 %v530_v21, %v530_v21 }
  0xe2   :  { %702 = vmatmul.bf16.vlgmr.msrb.gmra.mxu0 %v532_v24 }
  0xe3   :  { %715 = vmatmul.bf16.vlgmr.msrb.gmra.mxu2 %v533_v22 }
 0x15d   :  { %v690_v26 = vpop.f32.mrf.mxu3 }
 0x15e   :  { %v691_v27 = vadd.f32 %v1035_v25, %v690_v26 }
 0x15f   :  { %v703_v28 = vpop.f32.mrf.mxu0 }
 0x160   :  { %v704_v29 = vadd.f32 %v703_v28, %v691_v27 }
 0x165   :  { %v692_v32 = vpop.f32.mrf.mxu3 }
 0x166   :  { %v716_v30 = vpop.f32.mrf.mxu2 }
 0x167   :  { %v717_v31 = vadd.f32 %v716_v30, %v704_v29  ;;  %v705_v33 = vpop.f32.mrf.mxu0 }
 0x169   :  { %720 = vst [vmem:[#allocation11] sm:$0x3] %v717_v31 }
 0x16a   :  { %731 = dma.vmem_to_hbm [thread:$0]  %s727_s26, 32, %s729_s29, [#allocation4]  }
 0x16e   :  { %v718_v34 = vpop.f32.mrf.mxu2 }
 0x16f   :  { %1186 = dma.done.wait [#allocation4], 32  }
 0x170   :  { %1187 = vsyncadd [#allocation4], 4294967264 }
 0x171   :  { %736 = vsyncpa [#allocation3], 1 }
 0x172   :  { %737 = vsyncpa [#allocation6], 1 }
 0x173   :  { %738 = vsyncpa [#allocation9], 1 }
 0x174   :  { %739 = vsyncpa [#allocation4], 1 }

</bundles_post_ra>
